<compile_context>
chip_gen: v5e
topology: v5e:2x2
jax: 0.10.0
libtpu: 0.0.40
codegen_flags: <defaults>
</compile_context>

<pallas_src>
import jax
import jax.numpy as jnp
import numpy as np
from jax.experimental import pallas as pl
from jax.experimental.pallas import tpu as pltpu

IN_DIM = 28 * 28     # 784
HIDDEN = 128


def _softplus(v):
    # Numerically stable softplus in f32: max(v, 0) + log(1 + exp(-|v|))
    return jnp.maximum(v, 0.0) + jnp.log(1.0 + jnp.exp(-jnp.abs(v)))


def _mlp_cond_kernel(y_ref,                      # VMEM (B, 1)   int32 timesteps
                     x_ref,                      # VMEM (B, 784) f32
                     e_all_ref,                  # VMEM (n_steps, 3*128) f32
                     w1_ref, b1_ref,             # (784,128) (1,128)
                     w2_ref, b2_ref,             # (128,128) (1,128)
                     w3_ref, b3_ref,             # (128,128) (1,128)
                     w4_ref, b4_ref,             # (128,784) (1,784)
                     out_ref):                   # VMEM (B, 784) f32
    B = x_ref.shape[0]
    n_steps = e_all_ref.shape[0]

    # Embedding gather as a one-hot matmul on the MXU (no data-dependent
    # Ref indexing anywhere): gamma_all[i, :] = E_all[y[i], :].
    step_ids = jax.lax.broadcasted_iota(jnp.int32, (B, n_steps), 1)
    onehot = (step_ids == y_ref[...]).astype(jnp.float32)          # (B, n_steps)
    gamma = jnp.dot(onehot, e_all_ref[...],
                    preferred_element_type=jnp.float32)            # (B, 384)
    g1 = gamma[:, 0 * HIDDEN:1 * HIDDEN]
    g2 = gamma[:, 1 * HIDDEN:2 * HIDDEN]
    g3 = gamma[:, 2 * HIDDEN:3 * HIDDEN]

    h = x_ref[...]
    h = jnp.dot(h, w1_ref[...], preferred_element_type=jnp.float32) + b1_ref[...]
    h = _softplus(g1 * h)
    h = jnp.dot(h, w2_ref[...], preferred_element_type=jnp.float32) + b2_ref[...]
    h = _softplus(g2 * h)
    h = jnp.dot(h, w3_ref[...], preferred_element_type=jnp.float32) + b3_ref[...]
    h = _softplus(g3 * h)
    out_ref[...] = (jnp.dot(h, w4_ref[...], preferred_element_type=jnp.float32)
                    + b4_ref[...])


def mlp_conditional_forward(params, x, y):
    """x: (B, 1, 28, 28) f32, y: (B,) int timesteps -> (B, 1, 28, 28) f32."""
    w1, b1, e1, w2, b2, e2, w3, b3, e3, w4, b4 = params
    B = x.shape[0]
    n_steps = e1.shape[0]
    x_flat = x.reshape(B, IN_DIM).astype(jnp.float32)
    y2d = y.astype(jnp.int32).reshape(B, 1)
    # Pack the three embedding tables lane-wise so one gather serves all layers.
    e_all = jnp.concatenate([e1, e2, e3], axis=1)                  # (n_steps, 384)

    # Advisory cost estimate so XLA can overlap this custom call.
    matmul_flops = 2 * B * (n_steps * 3 * HIDDEN
                            + IN_DIM * HIDDEN + 2 * HIDDEN * HIDDEN
                            + HIDDEN * IN_DIM)
    ew_flops = B * (3 * 4 * HIDDEN + 2 * IN_DIM)       # gamma mul, bias add, softplus adds
    transcendentals = 2 * 3 * B * HIDDEN               # exp + log per softplus element
    bytes_accessed = 4 * (y2d.size + x_flat.size + B * IN_DIM
                          + sum(int(np.prod(p.shape)) for p in params))

    vmem = pltpu.MemorySpace.VMEM
    out_flat = pl.pallas_call(
        _mlp_cond_kernel,
        out_shape=jax.ShapeDtypeStruct((B, IN_DIM), jnp.float32),
        in_specs=[pl.BlockSpec(memory_space=vmem)] * 11,           # y, x, E_all, weights
        out_specs=pl.BlockSpec(memory_space=vmem),
        cost_estimate=pl.CostEstimate(flops=matmul_flops + ew_flops,
                                      transcendentals=transcendentals,
                                      bytes_accessed=bytes_accessed),
    )(y2d, x_flat, e_all, w1, b1, w2, b2, w3, b3, w4, b4)

    return out_flat.reshape(B, 1, 28, 28)


def init_params(key, n_steps):
    """Deterministic parameters mirroring the PyTorch module's init.

    Linear weights are stored (in, out) (transposed vs. torch) and biases as
    (1, out) so the kernel needs zero layout work; Embedding tables ~ U(0, 1).
    """
    k = jax.random.split(key, 11)

    def linear(kw, kb, fan_in, fan_out):
        bound = 1.0 / np.sqrt(fan_in)
        w = jax.random.uniform(kw, (fan_in, fan_out), jnp.float32, -bound, bound)
        b = jax.random.uniform(kb, (1, fan_out), jnp.float32, -bound, bound)
        return w, b

    w1, b1 = linear(k[0], k[1], IN_DIM, HIDDEN)
    w2, b2 = linear(k[2], k[3], HIDDEN, HIDDEN)
    w3, b3 = linear(k[4], k[5], HIDDEN, HIDDEN)
    w4, b4 = linear(k[6], k[7], HIDDEN, IN_DIM)
    e1 = jax.random.uniform(k[8], (n_steps, HIDDEN), jnp.float32)
    e2 = jax.random.uniform(k[9], (n_steps, HIDDEN), jnp.float32)
    e3 = jax.random.uniform(k[10], (n_steps, HIDDEN), jnp.float32)
    return (w1, b1, e1, w2, b2, e2, w3, b3, e3, w4, b4)


def reference_forward(params, x, y):
    """Pure-JAX reference with the same forward semantics as the PyTorch module."""
    w1, b1, e1, w2, b2, e2, w3, b3, e3, w4, b4 = params
    B = x.shape[0]
    hp = jax.lax.Precision.HIGHEST
    h = x.reshape(B, IN_DIM)
    h = _softplus(e1[y] * (jnp.dot(h, w1, precision=hp) + b1))
    h = _softplus(e2[y] * (jnp.dot(h, w2, precision=hp) + b2))
    h = _softplus(e3[y] * (jnp.dot(h, w3, precision=hp) + b3))
    out = jnp.dot(h, w4, precision=hp) + b4
    return out.reshape(B, 1, 28, 28)


if __name__ == "__main__":
    n_steps = 50
    batch = 8

    key = jax.random.PRNGKey(0)
    k_params, k_x, k_y = jax.random.split(key, 3)

    params = init_params(k_params, n_steps)
    x = jax.random.normal(k_x, (batch, 1, 28, 28), dtype=jnp.float32)
    y = jax.random.randint(k_y, (batch,), 0, n_steps, dtype=jnp.int32)

    out = mlp_conditional_forward(params, x, y)
    out = jax.block_until_ready(out)

    ref = reference_forward(params, x, y)
    assert out.shape == (batch, 1, 28, 28)
    np.testing.assert_allclose(np.asarray(out), np.asarray(ref), rtol=2e-2, atol=2e-2)

    print("KERNEL_OK")
</pallas_src>

<mosaic_0001>
module attributes {stable_mosaic.version = 11 : i64} {
  func.func @_mlp_cond_kernel(%arg0: memref<8x1xi32, #tpu.memory_space<vmem>>, %arg1: memref<8x784xf32, #tpu.memory_space<vmem>>, %arg2: memref<50x384xf32, #tpu.memory_space<vmem>>, %arg3: memref<784x128xf32, #tpu.memory_space<vmem>>, %arg4: memref<1x128xf32, #tpu.memory_space<vmem>>, %arg5: memref<128x128xf32, #tpu.memory_space<vmem>>, %arg6: memref<1x128xf32, #tpu.memory_space<vmem>>, %arg7: memref<128x128xf32, #tpu.memory_space<vmem>>, %arg8: memref<1x128xf32, #tpu.memory_space<vmem>>, %arg9: memref<128x784xf32, #tpu.memory_space<vmem>>, %arg10: memref<1x784xf32, #tpu.memory_space<vmem>>, %arg11: memref<8x784xf32, #tpu.memory_space<vmem>>) attributes {dimension_semantics = [], scalar_prefetch = 0 : i64, scratch_operands = 0 : i64, tpu.core_type = #tpu.core_type<tc>} {
    %0 = tpu.iota {dimensions = array<i32: 1>} : vector<8x50xi32>
    %c0 = arith.constant 0 : index
    %c0_0 = arith.constant 0 : index
    %1 = vector.load %arg0[%c0, %c0_0] : memref<8x1xi32, #tpu.memory_space<vmem>>, vector<8x1xi32>
    %2 = vector.broadcast %1 : vector<8x1xi32> to vector<8x50xi32>
    %3 = arith.cmpi eq, %0, %2 : vector<8x50xi32>
    %4 = arith.extui %3 : vector<8x50xi1> to vector<8x50xi32>
    %5 = arith.sitofp %4 : vector<8x50xi32> to vector<8x50xf32>
    %c0_1 = arith.constant 0 : index
    %c0_2 = arith.constant 0 : index
    %6 = vector.load %arg2[%c0_1, %c0_2] : memref<50x384xf32, #tpu.memory_space<vmem>>, vector<50x384xf32>
    %cst = arith.constant dense<0.000000e+00> : vector<8x384xf32>
    %7 = tpu.matmul %5, %6, %cst {dimension_numbers = #tpu.dot_dimension_numbers<[1], [0], [0], [1], [0, 0, 1, 1], [], []>} : vector<8x50xf32>, vector<50x384xf32>, vector<8x384xf32> -> vector<8x384xf32>
    %8 = vector.extract_strided_slice %7 {offsets = [0, 0], sizes = [8, 128], strides = [1, 1]} : vector<8x384xf32> to vector<8x128xf32>
    %9 = vector.extract_strided_slice %7 {offsets = [0, 128], sizes = [8, 128], strides = [1, 1]} : vector<8x384xf32> to vector<8x128xf32>
    %10 = vector.extract_strided_slice %7 {offsets = [0, 256], sizes = [8, 128], strides = [1, 1]} : vector<8x384xf32> to vector<8x128xf32>
    %c0_3 = arith.constant 0 : index
    %c0_4 = arith.constant 0 : index
    %11 = vector.load %arg1[%c0_3, %c0_4] : memref<8x784xf32, #tpu.memory_space<vmem>>, vector<8x784xf32>
    %c0_5 = arith.constant 0 : index
    %c0_6 = arith.constant 0 : index
    %12 = vector.load %arg3[%c0_5, %c0_6] : memref<784x128xf32, #tpu.memory_space<vmem>>, vector<784x128xf32>
    %cst_7 = arith.constant dense<0.000000e+00> : vector<8x128xf32>
    %13 = tpu.matmul %11, %12, %cst_7 {dimension_numbers = #tpu.dot_dimension_numbers<[1], [0], [0], [1], [0, 0, 1, 1], [], []>} : vector<8x784xf32>, vector<784x128xf32>, vector<8x128xf32> -> vector<8x128xf32>
    %c0_8 = arith.constant 0 : index
    %c0_9 = arith.constant 0 : index
    %14 = vector.load %arg4[%c0_8, %c0_9] : memref<1x128xf32, #tpu.memory_space<vmem>>, vector<1x128xf32>
    %15 = vector.broadcast %14 : vector<1x128xf32> to vector<8x128xf32>
    %16 = arith.addf %13, %15 : vector<8x128xf32>
    %17 = arith.mulf %8, %16 : vector<8x128xf32>
    %cst_10 = arith.constant 0.000000e+00 : f32
    %18 = vector.broadcast %cst_10 : f32 to vector<8x128xf32>
    %19 = arith.maximumf %17, %18 : vector<8x128xf32>
    %20 = math.absf %17 : vector<8x128xf32>
    %cst_11 = arith.constant 0.000000e+00 : f32
    %21 = vector.broadcast %cst_11 : f32 to vector<8x128xf32>
    %22 = arith.subf %21, %20 : vector<8x128xf32>
    %23 = math.exp %22 : vector<8x128xf32>
    %cst_12 = arith.constant 1.000000e+00 : f32
    %24 = vector.broadcast %cst_12 : f32 to vector<8x128xf32>
    %25 = arith.addf %24, %23 : vector<8x128xf32>
    %26 = math.log %25 : vector<8x128xf32>
    %27 = arith.addf %19, %26 : vector<8x128xf32>
    %c0_13 = arith.constant 0 : index
    %c0_14 = arith.constant 0 : index
    %28 = vector.load %arg5[%c0_13, %c0_14] : memref<128x128xf32, #tpu.memory_space<vmem>>, vector<128x128xf32>
    %cst_15 = arith.constant dense<0.000000e+00> : vector<8x128xf32>
    %29 = tpu.matmul %27, %28, %cst_15 {dimension_numbers = #tpu.dot_dimension_numbers<[1], [0], [0], [1], [0, 0, 1, 1], [], []>} : vector<8x128xf32>, vector<128x128xf32>, vector<8x128xf32> -> vector<8x128xf32>
    %c0_16 = arith.constant 0 : index
    %c0_17 = arith.constant 0 : index
    %30 = vector.load %arg6[%c0_16, %c0_17] : memref<1x128xf32, #tpu.memory_space<vmem>>, vector<1x128xf32>
    %31 = vector.broadcast %30 : vector<1x128xf32> to vector<8x128xf32>
    %32 = arith.addf %29, %31 : vector<8x128xf32>
    %33 = arith.mulf %9, %32 : vector<8x128xf32>
    %cst_18 = arith.constant 0.000000e+00 : f32
    %34 = vector.broadcast %cst_18 : f32 to vector<8x128xf32>
    %35 = arith.maximumf %33, %34 : vector<8x128xf32>
    %36 = math.absf %33 : vector<8x128xf32>
    %cst_19 = arith.constant 0.000000e+00 : f32
    %37 = vector.broadcast %cst_19 : f32 to vector<8x128xf32>
    %38 = arith.subf %37, %36 : vector<8x128xf32>
    %39 = math.exp %38 : vector<8x128xf32>
    %cst_20 = arith.constant 1.000000e+00 : f32
    %40 = vector.broadcast %cst_20 : f32 to vector<8x128xf32>
    %41 = arith.addf %40, %39 : vector<8x128xf32>
    %42 = math.log %41 : vector<8x128xf32>
    %43 = arith.addf %35, %42 : vector<8x128xf32>
    %c0_21 = arith.constant 0 : index
    %c0_22 = arith.constant 0 : index
    %44 = vector.load %arg7[%c0_21, %c0_22] : memref<128x128xf32, #tpu.memory_space<vmem>>, vector<128x128xf32>
    %cst_23 = arith.constant dense<0.000000e+00> : vector<8x128xf32>
    %45 = tpu.matmul %43, %44, %cst_23 {dimension_numbers = #tpu.dot_dimension_numbers<[1], [0], [0], [1], [0, 0, 1, 1], [], []>} : vector<8x128xf32>, vector<128x128xf32>, vector<8x128xf32> -> vector<8x128xf32>
    %c0_24 = arith.constant 0 : index
    %c0_25 = arith.constant 0 : index
    %46 = vector.load %arg8[%c0_24, %c0_25] : memref<1x128xf32, #tpu.memory_space<vmem>>, vector<1x128xf32>
    %47 = vector.broadcast %46 : vector<1x128xf32> to vector<8x128xf32>
    %48 = arith.addf %45, %47 : vector<8x128xf32>
    %49 = arith.mulf %10, %48 : vector<8x128xf32>
    %cst_26 = arith.constant 0.000000e+00 : f32
    %50 = vector.broadcast %cst_26 : f32 to vector<8x128xf32>
    %51 = arith.maximumf %49, %50 : vector<8x128xf32>
    %52 = math.absf %49 : vector<8x128xf32>
    %cst_27 = arith.constant 0.000000e+00 : f32
    %53 = vector.broadcast %cst_27 : f32 to vector<8x128xf32>
    %54 = arith.subf %53, %52 : vector<8x128xf32>
    %55 = math.exp %54 : vector<8x128xf32>
    %cst_28 = arith.constant 1.000000e+00 : f32
    %56 = vector.broadcast %cst_28 : f32 to vector<8x128xf32>
    %57 = arith.addf %56, %55 : vector<8x128xf32>
    %58 = math.log %57 : vector<8x128xf32>
    %59 = arith.addf %51, %58 : vector<8x128xf32>
    %c0_29 = arith.constant 0 : index
    %c0_30 = arith.constant 0 : index
    %60 = vector.load %arg9[%c0_29, %c0_30] : memref<128x784xf32, #tpu.memory_space<vmem>>, vector<128x784xf32>
    %cst_31 = arith.constant dense<0.000000e+00> : vector<8x784xf32>
    %61 = tpu.matmul %59, %60, %cst_31 {dimension_numbers = #tpu.dot_dimension_numbers<[1], [0], [0], [1], [0, 0, 1, 1], [], []>} : vector<8x128xf32>, vector<128x784xf32>, vector<8x784xf32> -> vector<8x784xf32>
    %c0_32 = arith.constant 0 : index
    %c0_33 = arith.constant 0 : index
    %62 = vector.load %arg10[%c0_32, %c0_33] : memref<1x784xf32, #tpu.memory_space<vmem>>, vector<1x784xf32>
    %63 = vector.broadcast %62 : vector<1x784xf32> to vector<8x784xf32>
    %64 = arith.addf %61, %63 : vector<8x784xf32>
    %c0_34 = arith.constant 0 : index
    %c0_35 = arith.constant 0 : index
    %65 = vector.load %arg11[%c0_34, %c0_35] : memref<8x784xf32, #tpu.memory_space<vmem>>, vector<8x784xf32>
    tpu.vector_store %arg11[%c0_34, %c0_35], %64 {strides = array<i32>} : memref<8x784xf32, #tpu.memory_space<vmem>>, vector<8x784xf32>,
    return
  }
}

</mosaic_0001>

<bundles_post_ra>
// kernel: tpu_custom_call.1
= control target key start
LH: loop header
LB: loop body
LE: loop exit
PB: predicated region body
PF: predicated region fallthrough
CT: control target
= control target key end

     0   :  { %vm73_vm0 = vcmask 1041408   ;;  %v850_v3 = vmov 0   ;;  %s1759_s0 = inlined_call_operand.vmem [shape: s32[8,1], index: 0, kind: input, shape index: {}]   ;;  %s1760_s1 = inlined_call_operand.vmem [shape: f32[8,784], index: 1, kind: input, shape index: {}]   ;;  %s1761_s2 = inlined_call_operand.vmem [shape: f32[50,384], index: 2, kind: input, shape index: {}]   ;;  %s1762_s3 = inlined_call_operand.vmem [shape: f32[784,128], index: 3, kind: input, shape index: {}]   ;;  %s1763_s4 = inlined_call_operand.vmem [shape: f32[1,128], index: 4, kind: input, shape index: {}]   ;;  %s1764_s5 = inlined_call_operand.vmem [shape: f32[128,128], index: 5, kind: input, shape index: {}]   ;;  %s1765_s6 = inlined_call_operand.vmem [shape: f32[1,128], index: 6, kind: input, shape index: {}]   ;;  %s1766_s7 = inlined_call_operand.vmem [shape: f32[128,128], index: 7, kind: input, shape index: {}]   ;;  %s1767_s8 = inlined_call_operand.vmem [shape: f32[1,128], index: 8, kind: input, shape index: {}]   ;;  %s1768_s9 = inlined_call_operand.vmem [shape: f32[128,784], index: 9, kind: input, shape index: {}]   ;;  %s1769_s10 = inlined_call_operand.vmem [shape: f32[1,784], index: 10, kind: input, shape index: {}]   ;;  %s1770_s11 = inlined_call_operand.hbm [shape: f32[8,784], index: 11, kind: output, shape index: {}]  }
   0x1   :  { %v41_v0 = vld [vmem:[%s1759_s0] sm:$0xff]  ;;  %v165_v1 = vld [vmem:[%s1762_s3 + $0x78] sm:$0xff]  ;;  %v164_v2 = vld [vmem:[%s1762_s3 + $0x70] sm:$0xff]  ;;  %808 = vset.pattern.permute.xlu0 %v850_v3 }
   0x2   :  { %256 = vmatpush.msra.mxu3 %v165_v1  ;;  %v66_v4 = vld [vmem:[%s1761_s2 + $0x90] sm:$0x3]  ;;  %43 = vperm.xlu0 %808, %v41_v0   ;;  %v163_v5 = vld [vmem:[%s1762_s3 + $0x68] sm:$0xff]  ;;  %v181_v6 = vld [vmem:[%s1762_s3 + $0xf8] sm:$0xff] }
   0x3   :  { %798 = vmatpush.msk.msra.mxu1 %vm73_vm0, %v66_v4  ;;  %v63_v7 = vld [vmem:[%s1761_s2 + $0x78] sm:$0xff]  ;;  %276 = vmatpush.msra.mxu0 %v181_v6  ;;  %v180_v8 = vld [vmem:[%s1762_s3 + $0xf0] sm:$0xff]  ;;  %v60_v9 = vld [vmem:[%s1761_s2 + $0x60] sm:$0xff] }
   0x4   :  { %257 = vmatpush.msra.mxu3 %v164_v2  ;;  %v162_v10 = vld [vmem:[%s1762_s3 + $0x60] sm:$0xff]  ;;  %v179_v11 = vld [vmem:[%s1762_s3 + $0xe8] sm:$0xff]  ;;  %v161_v13 = vld [vmem:[%s1762_s3 + $0x58] sm:$0xff] }
   0x5   :  { %93 = vmatpush.msra.mxu1 %v63_v7  ;;  %277 = vmatpush.msra.mxu0 %v180_v8  ;;  %v57_v12 = vld [vmem:[%s1761_s2 + $0x48] sm:$0xff]  ;;  %v178_v14 = vld [vmem:[%s1762_s3 + $0xe0] sm:$0xff]  ;;  %v54_v16 = vld [vmem:[%s1761_s2 + $0x30] sm:$0xff] }
   0x6   :  { %258 = vmatpush.msra.mxu3 %v163_v5  ;;  %v68_v15 = vld [vmem:[%s1761_s2 + $0xa0] sm:$0x3]  ;;  %v65_v17 = vld [vmem:[%s1761_s2 + $0x88] sm:$0xff]  ;;  %v160_v18 = vld [vmem:[%s1762_s3 + $0x50] sm:$0xff] }
   0x7   :  { %94 = vmatpush.msra.mxu1 %v60_v9  ;;  %278 = vmatpush.msra.mxu0 %v179_v11  ;;  %v177_v19 = vld [vmem:[%s1762_s3 + $0xd8] sm:$0xff]  ;;  %v62_v21 = vld [vmem:[%s1761_s2 + $0x70] sm:$0xff]  ;;  %v159_v22 = vld [vmem:[%s1762_s3 + $0x48] sm:$0xff] }
   0x8   :  { %259 = vmatpush.msra.mxu3 %v162_v10  ;;  %802 = vmatpush.msk.msra.mxu2 %vm73_vm0, %v68_v15  ;;  %v51_v20 = vld [vmem:[%s1761_s2 + $0x18] sm:$0xff]  ;;  %v176_v23 = vld [vmem:[%s1762_s3 + $0xd0] sm:$0xff]  ;;  %v48_v24 = vld [vmem:[%s1761_s2] sm:$0xff] }
   0x9   :  { %95 = vmatpush.msra.mxu1 %v57_v12  ;;  %279 = vmatpush.msra.mxu0 %v178_v14  ;;  %v59_v25 = vld [vmem:[%s1761_s2 + $0x58] sm:$0xff]  ;;  %v158_v26 = vld [vmem:[%s1762_s3 + $0x40] sm:$0xff]  ;;  %v175_v28 = vld [vmem:[%s1762_s3 + $0xc8] sm:$0xff] }
   0xa   :  { %260 = vmatpush.msra.mxu3 %v161_v13  ;;  %133 = vmatpush.msra.mxu2 %v65_v17  ;;  %v67_v27 = vld [vmem:[%s1761_s2 + $0x98] sm:$0x3]  ;;  %v56_v29 = vld [vmem:[%s1761_s2 + $0x40] sm:$0xff]  ;;  %v156_v31 = vld [vmem:[%s1762_s3 + $0x30] sm:$0xff] }
   0xb   :  { %96 = vmatpush.msra.mxu1 %v54_v16  ;;  %280 = vmatpush.msra.mxu0 %v177_v19  ;;  %v157_v30 = vld [vmem:[%s1762_s3 + $0x38] sm:$0xff]  ;;  %v64_v32 = vld [vmem:[%s1761_s2 + $0x80] sm:$0xff]  ;;  %v61_v34 = vld [vmem:[%s1761_s2 + $0x68] sm:$0xff] }
   0xc   :  { %261 = vmatpush.msra.mxu3 %v160_v18  ;;  %134 = vmatpush.msra.mxu2 %v62_v21  ;;  %v174_v33 = vld [vmem:[%s1762_s3 + $0xc0] sm:$0xff]  ;;  %v53_v35 = vld [vmem:[%s1761_s2 + $0x28] sm:$0xff]  ;;  %v173_v36 = vld [vmem:[%s1762_s3 + $0xb8] sm:$0xff] }
   0xd   :  { %97 = vmatpush.msra.mxu1 %v51_v20  ;;  %281 = vmatpush.msra.mxu0 %v176_v23  ;;  %v50_v37 = vld [vmem:[%s1761_s2 + $0x10] sm:$0xff] }
   0xe   :  { %262 = vmatpush.msra.mxu3 %v159_v22  ;;  %135 = vmatpush.msra.mxu2 %v59_v25 }
   0xf   :  { %98 = vmatpush.msra.mxu1 %v48_v24  ;;  %282 = vmatpush.msra.mxu0 %v175_v28 }
  0x10   :  { %263 = vmatpush.msra.mxu3 %v158_v26  ;;  %136 = vmatpush.msra.mxu2 %v56_v29 }
  0x11   :  { %800 = vmatpush.msk.msrb.mxu1 %vm73_vm0, %v67_v27 }
  0x12   :  { %264 = vmatpush.msra.mxu3 %v157_v30 }
  0x13   :  { %113 = vmatpush.msrb.mxu1 %v64_v32 }
  0x14   :  { %16 = vsyncpa [#allocation3], 0  ;;  %v155_v38 = vld [vmem:[%s1762_s3 + $0x28] sm:$0xff]  ;;  %283 = vmatpush.msra.mxu0 %v174_v33  ;;  %v58_v39 = vld [vmem:[%s1761_s2 + $0x50] sm:$0xff]  ;;  %137 = vmatpush.msra.mxu2 %v53_v35  ;;  %v39_v25 = vlaneseq  ;;  %vm69_vm1 = vcmask 408576   ;;  %vm252_vm3 = vcmask 130048  }
  0x15   :  { %265 = vmatpush.msra.mxu3 %v156_v31  ;;  %114 = vmatpush.msrb.mxu1 %v61_v34  ;;  %v172_v40 = vld [vmem:[%s1762_s3 + $0xb0] sm:$0xff]  ;;  %v213_v41 = vld [vmem:[%s1762_s3 + $0x1f8] sm:$0xff]  ;;  %v154_v42 = vld [vmem:[%s1762_s3 + $0x20] sm:$0xff] }
  0x16   :  { %284 = vmatpush.msra.mxu0 %v173_v36  ;;  %v55_v43 = vld [vmem:[%s1761_s2 + $0x38] sm:$0xff]  ;;  %138 = vmatpush.msra.mxu2 %v50_v37  ;;  %v171_v44 = vld [vmem:[%s1762_s3 + $0xa8] sm:$0xff]  ;;  %v52_v46 = vld [vmem:[%s1761_s2 + $0x20] sm:$0xff]  ;;  %v40_v32 = vand.u32 127, %v39_v25 }
  0x17   :  { %266 = vmatpush.msra.mxu3 %v155_v38  ;;  %115 = vmatpush.msrb.mxu1 %v58_v39  ;;  %v153_v45 = vld [vmem:[%s1762_s3 + $0x18] sm:$0xff]  ;;  %v170_v47 = vld [vmem:[%s1762_s3 + $0xa0] sm:$0xff]  ;;  %v152_v48 = vld [vmem:[%s1762_s3 + $0x10] sm:$0xff] }
  0x18   :  { %285 = vmatpush.msra.mxu0 %v172_v40  ;;  %316 = vmatpush.msrb.mxu2 %v213_v41  ;;  %v151_v49 = vld [vmem:[%s1762_s3 + $0x8] sm:$0xff]  ;;  %v150_v50 = vld [vmem:[%s1762_s3] sm:$0xff]  ;;  %v212_v51 = vld [vmem:[%s1762_s3 + $0x1f0] sm:$0xff] }
  0x19   :  { %267 = vmatpush.msra.mxu3 %v154_v42  ;;  %116 = vmatpush.msrb.mxu1 %v55_v43  ;;  %v229_v52 = vld [vmem:[%s1762_s3 + $0x278] sm:$0xff]  ;;  %v49_v53 = vld [vmem:[%s1761_s2 + $0x8] sm:$0xff]  ;;  %v228_v56 = vld [vmem:[%s1762_s3 + $0x270] sm:$0xff]  ;;  %v851_v43 = vmov 0.0  }
  0x1a   :  { %286 = vmatpush.msra.mxu0 %v171_v44  ;;  %317 = vmatpush.msrb.mxu2 %v212_v51  ;;  %v169_v54 = vld [vmem:[%s1762_s3 + $0x98] sm:$0xff]  ;;  %v211_v55 = vld [vmem:[%s1762_s3 + $0x1e8] sm:$0xff]  ;;  %v168_v57 = vld [vmem:[%s1762_s3 + $0x90] sm:$0xff] }
  0x1b   :  { %268 = vmatpush.msra.mxu3 %v153_v45  ;;  %117 = vmatpush.msrb.mxu1 %v52_v46  ;;  %v210_v58 = vld [vmem:[%s1762_s3 + $0x1e0] sm:$0xff]  ;;  %v227_v59 = vld [vmem:[%s1762_s3 + $0x268] sm:$0xff]  ;;  %v209_v61 = vld [vmem:[%s1762_s3 + $0x1d8] sm:$0xff] }
  0x1c   :  { %287 = vmatpush.msra.mxu0 %v170_v47  ;;  %318 = vmatpush.msrb.mxu2 %v211_v55  ;;  %v167_v60 = vld [vmem:[%s1762_s3 + $0x88] sm:$0xff]  ;;  %v226_v62 = vld [vmem:[%s1762_s3 + $0x260] sm:$0xff]  ;;  %v208_v0 = vld [vmem:[%s1762_s3 + $0x1d0] sm:$0xff] }
  0x1d   :  { %269 = vmatpush.msra.mxu3 %v152_v48  ;;  %118 = vmatpush.msrb.mxu1 %v49_v53  ;;  %v166_v63 = vld [vmem:[%s1762_s3 + $0x80] sm:$0xff]  ;;  %v225_v1 = vld [vmem:[%s1762_s3 + $0x258] sm:$0xff]  ;;  %v207_v3 = vld [vmem:[%s1762_s3 + $0x1c8] sm:$0xff] }
  0x1e   :  { %288 = vmatpush.msra.mxu0 %v169_v54  ;;  %319 = vmatpush.msrb.mxu2 %v210_v58  ;;  %v245_v2 = vld [vmem:[%s1762_s3 + $0x2f8] sm:$0xff]  ;;  %v224_v4 = vld [vmem:[%s1762_s3 + $0x250] sm:$0xff]  ;;  %v206_v6 = vld [vmem:[%s1762_s3 + $0x1c0] sm:$0xff] }
  0x1f   :  { %270 = vmatpush.msra.mxu3 %v151_v49  ;;  %v244_v5 = vld [vmem:[%s1762_s3 + $0x2f0] sm:$0xff]  ;;  %v223_v7 = vld [vmem:[%s1762_s3 + $0x248] sm:$0xff]  ;;  %v205_v9 = vld [vmem:[%s1762_s3 + $0x1b8] sm:$0xff] }
  0x20   :  { %289 = vmatpush.msra.mxu0 %v168_v57  ;;  %320 = vmatpush.msrb.mxu2 %v209_v61  ;;  %v243_v8 = vld [vmem:[%s1762_s3 + $0x2e8] sm:$0xff]  ;;  %v222_v10 = vld [vmem:[%s1762_s3 + $0x240] sm:$0xff]  ;;  %v204_v12 = vld [vmem:[%s1762_s3 + $0x1b0] sm:$0xff] }
  0x21   :  { %271 = vmatpush.msra.mxu3 %v150_v50  ;;  %v242_v11 = vld [vmem:[%s1762_s3 + $0x2e0] sm:$0xff]  ;;  %v221_v13 = vld [vmem:[%s1762_s3 + $0x238] sm:$0xff]  ;;  %v203_v15 = vld [vmem:[%s1762_s3 + $0x1a8] sm:$0xff] }
  0x22   :  { %290 = vmatpush.msra.mxu0 %v167_v60  ;;  %321 = vmatpush.msrb.mxu2 %v208_v0  ;;  %v241_v14 = vld [vmem:[%s1762_s3 + $0x2d8] sm:$0xff]  ;;  %v220_v16 = vld [vmem:[%s1762_s3 + $0x230] sm:$0xff]  ;;  %v202_v18 = vld [vmem:[%s1762_s3 + $0x1a0] sm:$0xff] }
  0x23   :  { %336 = vmatpush.msrb.mxu3 %v229_v52  ;;  %v240_v17 = vld [vmem:[%s1762_s3 + $0x2d0] sm:$0xff]  ;;  %v219_v19 = vld [vmem:[%s1762_s3 + $0x228] sm:$0xff]  ;;  %v201_v21 = vld [vmem:[%s1762_s3 + $0x198] sm:$0xff] }
  0x24   :  { %291 = vmatpush.msra.mxu0 %v166_v63  ;;  %322 = vmatpush.msrb.mxu2 %v207_v3  ;;  %v239_v20 = vld [vmem:[%s1762_s3 + $0x2c8] sm:$0xff]  ;;  %v218_v22 = vld [vmem:[%s1762_s3 + $0x220] sm:$0xff]  ;;  %v200_v26 = vld [vmem:[%s1762_s3 + $0x190] sm:$0xff] }
  0x25   :  { %337 = vmatpush.msrb.mxu3 %v228_v56  ;;  %v238_v23 = vld [vmem:[%s1762_s3 + $0x2c0] sm:$0xff]  ;;  %v217_v27 = vld [vmem:[%s1762_s3 + $0x218] sm:$0xff]  ;;  %v199_v29 = vld [vmem:[%s1762_s3 + $0x188] sm:$0xff] }
  0x26   :  { %356 = vmatpush.msrb.mxu0 %v245_v2  ;;  %323 = vmatpush.msrb.mxu2 %v206_v6  ;;  %v143_v24 = vld [vmem:[%s1760_s1] sm:$0xff]  ;;  %v237_v28 = vld [vmem:[%s1762_s3 + $0x2b8] sm:$0xff]  ;;  %v216_v30 = vld [vmem:[%s1762_s3 + $0x210] sm:$0xff] }
  0x27   :  { %338 = vmatpush.msrb.mxu3 %v227_v59  ;;  %v236_v31 = vld [vmem:[%s1762_s3 + $0x2b0] sm:$0xff]  ;;  %v198_v33 = vld [vmem:[%s1762_s3 + $0x180] sm:$0xff]  ;;  %v215_v34 = vld [vmem:[%s1762_s3 + $0x208] sm:$0xff] }
  0x28   :  { %357 = vmatpush.msrb.mxu0 %v244_v5  ;;  %324 = vmatpush.msrb.mxu2 %v205_v9  ;;  %v235_v35 = vld [vmem:[%s1762_s3 + $0x2a8] sm:$0xff]  ;;  %v214_v36 = vld [vmem:[%s1762_s3 + $0x200] sm:$0xff]  ;;  %v197_v41 = vld [vmem:[%s1762_s3 + $0x178] sm:$0xff] }
  0x29   :  { %339 = vmatpush.msrb.mxu3 %v226_v62  ;;  %v234_v37 = vld [vmem:[%s1762_s3 + $0x2a0] sm:$0xff]  ;;  %v144_v39 = vld [vmem:[%s1760_s1 + $0x8] sm:$0xff]  ;;  %v233_v42 = vld [vmem:[%s1762_s3 + $0x298] sm:$0xff] }
  0x2a   :  { %358 = vmatpush.msrb.mxu0 %v243_v8  ;;  %325 = vmatpush.msrb.mxu2 %v204_v12  ;;  %v147_v40 = vld [vmem:[%s1760_s1 + $0x20] sm:$0xff]  ;;  %v196_v45 = vld [vmem:[%s1762_s3 + $0x170] sm:$0xff]  ;;  %v195_v47 = vld [vmem:[%s1762_s3 + $0x168] sm:$0xff] }
  0x2b   :  { %340 = vmatpush.msrb.mxu3 %v225_v1  ;;  %292 = vmatmul.f32.vlgmr.msra.gmra.mxu0 %v144_v39  ;;  %v232_v46 = vld [vmem:[%s1762_s3 + $0x290] sm:$0xff]  ;;  %v231_v48 = vld [vmem:[%s1762_s3 + $0x288] sm:$0xff]  ;;  %v194_v49 = vld [vmem:[%s1762_s3 + $0x160] sm:$0xff] }
  0x2c   :  { %359 = vmatpush.msrb.mxu0 %v242_v11  ;;  %326 = vmatpush.msrb.mxu2 %v203_v15  ;;  %v230_v50 = vld [vmem:[%s1762_s3 + $0x280] sm:$0xff]  ;;  %v146_v51 = vld [vmem:[%s1760_s1 + $0x18] sm:$0xff]  ;;  %v148_v53 = vld [vmem:[%s1760_s1 + $0x28] sm:$0xff] }
  0x2d   :  { %341 = vmatpush.msrb.mxu3 %v224_v4  ;;  %v193_v52 = vld [vmem:[%s1762_s3 + $0x158] sm:$0xff]  ;;  %v192_v54 = vld [vmem:[%s1762_s3 + $0x150] sm:$0xff]  ;;  %v191_v55 = vld [vmem:[%s1762_s3 + $0x148] sm:$0xff] }
  0x2e   :  { %360 = vmatpush.msrb.mxu0 %v241_v14  ;;  %327 = vmatpush.msrb.mxu2 %v202_v18  ;;  %v190_v56 = vld [vmem:[%s1762_s3 + $0x140] sm:$0xff]  ;;  %v189_v57 = vld [vmem:[%s1762_s3 + $0x138] sm:$0xff]  ;;  %v188_v58 = vld [vmem:[%s1762_s3 + $0x130] sm:$0xff] }
  0x2f   :  { %342 = vmatpush.msrb.mxu3 %v223_v7  ;;  %v187_v59 = vld [vmem:[%s1762_s3 + $0x128] sm:$0xff]  ;;  %v186_v60 = vld [vmem:[%s1762_s3 + $0x120] sm:$0xff]  ;;  %v185_v61 = vld [vmem:[%s1762_s3 + $0x118] sm:$0xff] }
  0x30   :  { %361 = vmatpush.msrb.mxu0 %v240_v17  ;;  %328 = vmatpush.msrb.mxu2 %v201_v21  ;;  %v184_v62 = vld [vmem:[%s1762_s3 + $0x110] sm:$0xff]  ;;  %v183_v63 = vld [vmem:[%s1762_s3 + $0x108] sm:$0xff]  ;;  %v182_v0 = vld [vmem:[%s1762_s3 + $0x100] sm:$0xff] }
  0x31   :  { %343 = vmatpush.msrb.mxu3 %v222_v10  ;;  %v145_v1 = vld [vmem:[%s1760_s1 + $0x10] sm:$0xff]  ;;  %v247_v2 = vld [vmem:[%s1762_s3 + $0x308] sm:$0xff]  ;;  %v246_v3 = vld [vmem:[%s1762_s3 + $0x300] sm:$0xff]  ;;  %s788_s3 = sshll.u32 %s1770_s11, 4  ;;  %s789_s3 = int_to_ptr.hbm [resolvable:$true] %s788_s3 }
  0x32   :  { %362 = vmatpush.msrb.mxu0 %v239_v20  ;;  %272 = vmatmul.f32.vlgmr.msra.gmra.mxu3 %v143_v24  ;;  %v149_v4 = vld [vmem:[%s1760_s1 + $0x30] sm:$0xff]  ;;  %v421_v5 = vld [vmem:[%s1764_s5 + $0x78] sm:$0xff]  ;;  %v419_v7 = vld [vmem:[%s1764_s5 + $0x68] sm:$0xff] }
  0x33   :  { %344 = vmatpush.msrb.mxu3 %v221_v13  ;;  %329 = vmatpush.msrb.mxu2 %v200_v26  ;;  %v420_v6 = vld [vmem:[%s1764_s5 + $0x70] sm:$0xff]  ;;  %v418_v8 = vld [vmem:[%s1764_s5 + $0x60] sm:$0xff]  ;;  %v417_v10 = vld [vmem:[%s1764_s5 + $0x58] sm:$0xff] }
  0x34   :  { %363 = vmatpush.msrb.mxu0 %v238_v23  ;;  %v416_v11 = vld [vmem:[%s1764_s5 + $0x50] sm:$0xff]  ;;  %v415_v12 = vld [vmem:[%s1764_s5 + $0x48] sm:$0xff]  ;;  %v809_v13 = vld [vmem:[%s1763_s4] ss:$0 sm:$0xff] }
  0x35   :  { %345 = vmatpush.msrb.mxu3 %v220_v16  ;;  %330 = vmatpush.msrb.mxu2 %v199_v29  ;;  %v414_v14 = vld [vmem:[%s1764_s5 + $0x40] sm:$0xff]  ;;  %v413_v16 = vld [vmem:[%s1764_s5 + $0x38] sm:$0xff]  ;;  %v412_v20 = vld [vmem:[%s1764_s5 + $0x30] sm:$0xff] }
  0x36   :  { %364 = vmatpush.msrb.mxu0 %v237_v28  ;;  %v410_v24 = vld [vmem:[%s1764_s5 + $0x20] sm:$0xff]  ;;  %v409_v25 = vld [vmem:[%s1764_s5 + $0x18] sm:$0xff]  ;;  %v408_v29 = vld [vmem:[%s1764_s5 + $0x10] sm:$0xff] }
  0x37   :  { %346 = vmatpush.msrb.mxu3 %v219_v19  ;;  %331 = vmatpush.msrb.mxu2 %v198_v33 }
  0x38   :  { %365 = vmatpush.msrb.mxu0 %v236_v31 }
  0x39   :  { %347 = vmatpush.msrb.mxu3 %v218_v22  ;;  %v411_v22 = vld [vmem:[%s1764_s5 + $0x28] sm:$0xff] }
  0x3a   :  { %366 = vmatpush.msrb.mxu0 %v235_v35  ;;  %v406_v35 = vld [vmem:[%s1764_s5] sm:$0xff] }
  0x3b   :  { %348 = vmatpush.msrb.mxu3 %v217_v27 }
  0x3c   :  { %367 = vmatpush.msrb.mxu0 %v234_v37 }
  0x3d   :  { %349 = vmatpush.msrb.mxu3 %v216_v30 }
  0x3e   :  { %368 = vmatpush.msrb.mxu0 %v233_v42 }
  0x3f   :  { %350 = vmatpush.msrb.mxu3 %v215_v34 }
  0x40   :  { %369 = vmatpush.msrb.mxu0 %v232_v46 }
  0x41   :  { %351 = vmatpush.msrb.mxu3 %v214_v36 }
  0x42   :  { %352 = vmatmul.f32.vlgmr.msrb.gmra.mxu3 %v147_v40  ;;  %370 = vmatpush.msrb.mxu0 %v231_v48 }
  0x44   :  { %371 = vmatpush.msrb.mxu0 %v230_v50  ;;  %v470_v50 = vld [vmem:[%s1766_s7 + $0x70] sm:$0xff] }
  0x45   :  { %372 = vmatmul.f32.vlgmr.msrb.gmra.mxu0 %v148_v53  ;;  %v467_v53 = vld [vmem:[%s1766_s7 + $0x58] sm:$0xff] }
  0x74   :  { %v44_v38 = vpop.permute.xlu0 %43 }
  0x75   :  { %vm45_vm2 = vcmp.eq.s32.totalorder %v40_v32, %v44_v38  ;;  %v407_v32 = vld [vmem:[%s1764_s5 + $0x8] sm:$0xff] }
  0x76   :  { %v797_v44 = vsel %vm45_vm2, 1.0, %v851_v43 }
  0x77   :  { %799 = vmatmul.msk.f32.vlgmr.msra.gmra.mxu1 %vm69_vm1, %v797_v44  ;;  %803 = vmatmul.msk.f32.vlgmr.msra.gmra.mxu2 %vm69_vm1, %v797_v44 }
  0x78   :  { %296 = vmatpush.msra.mxu1 %v197_v41  ;;  %426 = vmatpush.msra.mxu2 %v421_v5 }
  0x7a   :  { %297 = vmatpush.msra.mxu1 %v196_v45  ;;  %427 = vmatpush.msra.mxu2 %v420_v6  ;;  %v604_v6 = vld [vmem:[%s1768_s9 + $0x310] sm:$0xff] }
  0x7c   :  { %298 = vmatpush.msra.mxu1 %v195_v47  ;;  %428 = vmatpush.msra.mxu2 %v419_v7  ;;  %v605_v7 = vld [vmem:[%s1768_s9 + $0x318] sm:$0xff] }
  0x7e   :  { %299 = vmatpush.msra.mxu1 %v194_v49  ;;  %429 = vmatpush.msra.mxu2 %v418_v8  ;;  %v471_v49 = vld [vmem:[%s1766_s7 + $0x78] sm:$0xff]  ;;  %v606_v8 = vld [vmem:[%s1768_s9 + $0x320] sm:$0xff] }
  0x7f   :  { %801 = vmatmul.msk.f32.vlgmr.msrb.gmra.mxu1 %vm69_vm1, %v797_v44  ;;  %332 = vmatmul.f32.vlgmr.msrb.gmra.mxu2 %v146_v51  ;;  %v469_v51 = vld [vmem:[%s1766_s7 + $0x68] sm:$0xff] }
  0x80   :  { %300 = vmatpush.msra.mxu1 %v193_v52  ;;  %430 = vmatpush.msra.mxu2 %v417_v10  ;;  %v468_v52 = vld [vmem:[%s1766_s7 + $0x60] sm:$0xff]  ;;  %v597_v10 = vld [vmem:[%s1768_s9 + $0x2d8] sm:$0xff] }
  0x82   :  { %301 = vmatpush.msra.mxu1 %v192_v54  ;;  %431 = vmatpush.msra.mxu2 %v416_v11  ;;  %v466_v54 = vld [vmem:[%s1766_s7 + $0x50] sm:$0xff]  ;;  %v598_v11 = vld [vmem:[%s1768_s9 + $0x2e0] sm:$0xff] }
  0x84   :  { %302 = vmatpush.msra.mxu1 %v191_v55  ;;  %432 = vmatpush.msra.mxu2 %v415_v12  ;;  %v465_v55 = vld [vmem:[%s1766_s7 + $0x48] sm:$0xff] }
  0x85   :  { %v599_v12 = vld [vmem:[%s1768_s9 + $0x2e8] sm:$0xff] }
  0x86   :  { %303 = vmatpush.msra.mxu1 %v190_v56  ;;  %433 = vmatpush.msra.mxu2 %v414_v14  ;;  %v464_v56 = vld [vmem:[%s1766_s7 + $0x40] sm:$0xff] }
  0x87   :  { %v590_v14 = vld [vmem:[%s1768_s9 + $0x2a0] sm:$0xff] }
  0x88   :  { %304 = vmatpush.msra.mxu1 %v189_v57  ;;  %434 = vmatpush.msra.mxu2 %v413_v16  ;;  %v463_v57 = vld [vmem:[%s1766_s7 + $0x38] sm:$0xff]  ;;  %v592_v16 = vld [vmem:[%s1768_s9 + $0x2b0] sm:$0xff] }
  0x8a   :  { %305 = vmatpush.msra.mxu1 %v188_v58  ;;  %435 = vmatpush.msra.mxu2 %v412_v20  ;;  %v462_v58 = vld [vmem:[%s1766_s7 + $0x30] sm:$0xff] }
  0x8b   :  { %v584_v20 = vld [vmem:[%s1768_s9 + $0x270] sm:$0xff] }
  0x8c   :  { %306 = vmatpush.msra.mxu1 %v187_v59  ;;  %436 = vmatpush.msra.mxu2 %v411_v22  ;;  %v461_v59 = vld [vmem:[%s1766_s7 + $0x28] sm:$0xff] }
  0x8e   :  { %307 = vmatpush.msra.mxu1 %v186_v60  ;;  %437 = vmatpush.msra.mxu2 %v410_v24  ;;  %v460_v60 = vld [vmem:[%s1766_s7 + $0x20] sm:$0xff]  ;;  %v577_v24 = vld [vmem:[%s1768_s9 + $0x238] sm:$0xff] }
  0x90   :  { %308 = vmatpush.msra.mxu1 %v185_v61  ;;  %438 = vmatpush.msra.mxu2 %v409_v25  ;;  %v459_v61 = vld [vmem:[%s1766_s7 + $0x18] sm:$0xff]  ;;  %v578_v25 = vld [vmem:[%s1768_s9 + $0x240] sm:$0xff] }
  0x92   :  { %309 = vmatpush.msra.mxu1 %v184_v62  ;;  %439 = vmatpush.msra.mxu2 %v408_v29  ;;  %v458_v62 = vld [vmem:[%s1766_s7 + $0x10] sm:$0xff]  ;;  %v571_v29 = vld [vmem:[%s1768_s9 + $0x208] sm:$0xff] }
  0x94   :  { %310 = vmatpush.msra.mxu1 %v183_v63  ;;  %440 = vmatpush.msra.mxu2 %v407_v32  ;;  %v457_v63 = vld [vmem:[%s1766_s7 + $0x8] sm:$0xff]  ;;  %v564_v32 = vld [vmem:[%s1768_s9 + $0x1d0] sm:$0xff] }
  0x96   :  { %311 = vmatpush.msra.mxu1 %v182_v0  ;;  %441 = vmatpush.msra.mxu2 %v406_v35  ;;  %v810_v0 = vld [vmem:[%s1765_s6] ss:$0 sm:$0xff]  ;;  %v557_v35 = vld [vmem:[%s1768_s9 + $0x198] sm:$0xff] }
  0x97   :  { %312 = vmatmul.f32.vlgmr.msra.gmra.mxu1 %v145_v1  ;;  %v456_v1 = vld [vmem:[%s1766_s7] sm:$0xff] }
  0x98   :  { %390 = vmatpush.msrb.mxu1 %v247_v2  ;;  %v611_v2 = vld [vmem:[%s1768_s9 + $0x348] sm:$0xff] }
  0x99   :  { %634 = vmatpush.msra.mxu3 %v611_v2  ;;  %v508_v2 = vld [vmem:[%s1768_s9 + $0x10] sm:$0xff] }
  0x9a   :  { %391 = vmatpush.msrb.mxu1 %v246_v3  ;;  %v612_v3 = vld [vmem:[%s1768_s9 + $0x350] sm:$0xff] }
  0x9b   :  { %654 = vmatpush.msra.mxu0 %v612_v3  ;;  %635 = vmatpush.msra.mxu3 %v604_v6  ;;  %v586_v3 = vld [vmem:[%s1768_s9 + $0x280] sm:$0xff]  ;;  %v617_v6 = vld [vmem:[%s1768_s9 + $0x378] sm:$0xff] }
  0x9c   :  { %476 = vmatpush.msra.mxu1 %v471_v49 }
  0x9d   :  { %655 = vmatpush.msra.mxu0 %v605_v7  ;;  %636 = vmatpush.msra.mxu3 %v597_v10  ;;  %v579_v7 = vld [vmem:[%s1768_s9 + $0x248] sm:$0xff]  ;;  %v610_v10 = vld [vmem:[%s1768_s9 + $0x340] sm:$0xff] }
  0x9e   :  { %477 = vmatpush.msra.mxu1 %v470_v50 }
  0x9f   :  { %804 = vmatmul.msk.f32.vlgmr.msrb.gmra.mxu1 %vm252_vm3, %v149_v4  ;;  %v613_v4 = vld [vmem:[%s1768_s9 + $0x358] sm:$0xff]  ;;  %656 = vmatpush.msra.mxu0 %v598_v11  ;;  %v572_v11 = vld [vmem:[%s1768_s9 + $0x210] sm:$0xff] }
  0xa0   :  { %478 = vmatpush.msra.mxu1 %v469_v51  ;;  %674 = vmatpush.msrb.mxu2 %v613_v4  ;;  %v614_v51 = vld [vmem:[%s1768_s9 + $0x360] sm:$0xff]  ;;  %v615_v4 = vld [vmem:[%s1768_s9 + $0x368] sm:$0xff] }
  0xa1   :  { %637 = vmatpush.msra.mxu3 %v590_v14  ;;  %v603_v14 = vld [vmem:[%s1768_s9 + $0x308] sm:$0xff] }
  0xa2   :  { %479 = vmatpush.msra.mxu1 %v468_v52  ;;  %675 = vmatpush.msrb.mxu2 %v606_v8  ;;  %v527_v52 = vld [vmem:[%s1768_s9 + $0xa8] sm:$0xff]  ;;  %v608_v8 = vld [vmem:[%s1768_s9 + $0x330] sm:$0xff] }
  0xa4   :  { %480 = vmatpush.msra.mxu1 %v467_v53  ;;  %676 = vmatpush.msrb.mxu2 %v599_v12  ;;  %v528_v53 = vld [vmem:[%s1768_s9 + $0xb0] sm:$0xff]  ;;  %v601_v12 = vld [vmem:[%s1768_s9 + $0x2f8] sm:$0xff] }
  0xa6   :  { %481 = vmatpush.msra.mxu1 %v466_v54  ;;  %677 = vmatpush.msrb.mxu2 %v592_v16  ;;  %v529_v54 = vld [vmem:[%s1768_s9 + $0xb8] sm:$0xff]  ;;  %v594_v16 = vld [vmem:[%s1768_s9 + $0x2c0] sm:$0xff] }
  0xa8   :  { %v293_v21 = vpop.f32.mrf.mxu0  ;;  %482 = vmatpush.msra.mxu1 %v465_v55  ;;  %v607_v55 = vld [vmem:[%s1768_s9 + $0x328] sm:$0xff] }
  0xaa   :  { %483 = vmatpush.msra.mxu1 %v464_v56  ;;  %v520_v56 = vld [vmem:[%s1768_s9 + $0x70] sm:$0xff] }
  0xac   :  { %484 = vmatpush.msra.mxu1 %v463_v57  ;;  %v521_v57 = vld [vmem:[%s1768_s9 + $0x78] sm:$0xff] }
  0xae   :  { %485 = vmatpush.msra.mxu1 %v462_v58  ;;  %v522_v58 = vld [vmem:[%s1768_s9 + $0x80] sm:$0xff] }
  0xb0   :  { %486 = vmatpush.msra.mxu1 %v461_v59  ;;  %v600_v59 = vld [vmem:[%s1768_s9 + $0x2f0] sm:$0xff] }
  0xb2   :  { %487 = vmatpush.msra.mxu1 %v460_v60  ;;  %v513_v60 = vld [vmem:[%s1768_s9 + $0x38] sm:$0xff] }
  0xb4   :  { %488 = vmatpush.msra.mxu1 %v459_v61  ;;  %v514_v61 = vld [vmem:[%s1768_s9 + $0x40] sm:$0xff] }
  0xb5   :  { %v273_v15 = vpop.f32.mrf.mxu3 }
  0xb6   :  { %v274_v19 = vadd.f32 %v809_v13, %v273_v15  ;;  %489 = vmatpush.msra.mxu1 %v458_v62  ;;  %v591_v15 = vld [vmem:[%s1768_s9 + $0x2a8] sm:$0xff] }
  0xb7   :  { %657 = vmatpush.msra.mxu0 %v591_v15  ;;  %v515_v62 = vld [vmem:[%s1768_s9 + $0x48] sm:$0xff]  ;;  %v565_v15 = vld [vmem:[%s1768_s9 + $0x1d8] sm:$0xff] }
  0xb8   :  { %v294_v23 = vadd.f32 %v293_v21, %v274_v19  ;;  %490 = vmatpush.msra.mxu1 %v457_v63  ;;  %v585_v21 = vld [vmem:[%s1768_s9 + $0x278] sm:$0xff] }
  0xb9   :  { %658 = vmatpush.msra.mxu0 %v584_v20  ;;  %678 = vmatpush.msrb.mxu2 %v585_v21  ;;  %v593_v63 = vld [vmem:[%s1768_s9 + $0x2b8] sm:$0xff]  ;;  %v558_v20 = vld [vmem:[%s1768_s9 + $0x1a0] sm:$0xff]  ;;  %v587_v21 = vld [vmem:[%s1768_s9 + $0x288] sm:$0xff] }
  0xba   :  { %491 = vmatpush.msra.mxu1 %v456_v1  ;;  %v507_v1 = vld [vmem:[%s1768_s9 + $0x8] sm:$0xff] }
  0xbb   :  { %659 = vmatpush.msra.mxu0 %v577_v24  ;;  %679 = vmatpush.msrb.mxu2 %v578_v25  ;;  %v551_v24 = vld [vmem:[%s1768_s9 + $0x168] sm:$0xff]  ;;  %v580_v25 = vld [vmem:[%s1768_s9 + $0x250] sm:$0xff] }
  0xbc   :  { %694 = vmatpush.msrb.mxu1 %v614_v51  ;;  %v539_v51 = vld [vmem:[%s1768_s9 + $0x108] sm:$0xff] }
  0xbd   :  { %680 = vmatpush.msrb.mxu2 %v571_v29  ;;  %v573_v29 = vld [vmem:[%s1768_s9 + $0x218] sm:$0xff] }
  0xbe   :  { %695 = vmatpush.msrb.mxu1 %v607_v55  ;;  %v532_v55 = vld [vmem:[%s1768_s9 + $0xd0] sm:$0xff] }
  0xbf   :  { %681 = vmatpush.msrb.mxu2 %v564_v32  ;;  %v537_v32 = vld [vmem:[%s1768_s9 + $0xf8] sm:$0xff] }
  0xc0   :  { %696 = vmatpush.msrb.mxu1 %v600_v59  ;;  %v525_v59 = vld [vmem:[%s1768_s9 + $0x98] sm:$0xff] }
  0xc1   :  { %682 = vmatpush.msrb.mxu2 %v557_v35  ;;  %v568_v35 = vld [vmem:[%s1768_s9 + $0x1f0] sm:$0xff] }
  0xc2   :  { %v373_v33 = vpop.f32.mrf.mxu0  ;;  %697 = vmatpush.msrb.mxu1 %v593_v63 }
  0xc4   :  { %698 = vmatpush.msrb.mxu1 %v586_v3 }
  0xc5   :  { %v353_v30 = vpop.f32.mrf.mxu3 }
  0xc6   :  { %699 = vmatpush.msrb.mxu1 %v579_v7 }
  0xc8   :  { %700 = vmatpush.msrb.mxu1 %v572_v11 }
  0xca   :  { %701 = vmatpush.msrb.mxu1 %v565_v15 }
  0xcc   :  { %702 = vmatpush.msrb.mxu1 %v558_v20 }
  0xce   :  { %703 = vmatpush.msrb.mxu1 %v551_v24 }
  0xf4   :  { %v100_v9 = vpop.f32.mrf.mxu1 }
  0xfa   :  { %v1331_v17 = vpop.f32.mrf.mxu2 }
  0xfc   :  { %v1333_v18 = vpop.f32.mrf.mxu1 }
 0x102   :  { %v333_v27 = vpop.f32.mrf.mxu2 }
 0x114   :  { %v313_v26 = vpop.f32.mrf.mxu1 }
 0x115   :  { %v314_v28 = vadd.f32 %v313_v26, %v294_v23  ;;  %v576_v23 = vld [vmem:[%s1768_s9 + $0x230] sm:$0xff] }
 0x117   :  { %v334_v31 = vadd.f32 %v333_v27, %v314_v28  ;;  %v569_v27 = vld [vmem:[%s1768_s9 + $0x1f8] sm:$0xff]  ;;  %v570_v28 = vld [vmem:[%s1768_s9 + $0x200] sm:$0xff] }
 0x118   :  { %660 = vmatpush.msra.mxu0 %v570_v28  ;;  %v544_v28 = vld [vmem:[%s1768_s9 + $0x130] sm:$0xff] }
 0x119   :  { %v354_v34 = vadd.f32 %v353_v30, %v334_v31  ;;  %v562_v30 = vld [vmem:[%s1768_s9 + $0x1c0] sm:$0xff]  ;;  %v563_v31 = vld [vmem:[%s1768_s9 + $0x1c8] sm:$0xff]  ;;  %704 = vmatpush.msrb.mxu1 %v544_v28 }
 0x11a   :  { %661 = vmatpush.msra.mxu0 %v563_v31  ;;  %v575_v31 = vld [vmem:[%s1768_s9 + $0x228] sm:$0xff] }
 0x11b   :  { %v374_v36 = vadd.f32 %v373_v33, %v354_v34  ;;  %v555_v33 = vld [vmem:[%s1768_s9 + $0x188] sm:$0xff]  ;;  %v556_v34 = vld [vmem:[%s1768_s9 + $0x190] sm:$0xff]  ;;  %705 = vmatpush.msrb.mxu1 %v537_v32 }
 0x11c   :  { %v393_v37 = vpop.f32.mrf.mxu1  ;;  %662 = vmatpush.msra.mxu0 %v556_v34  ;;  %v567_v34 = vld [vmem:[%s1768_s9 + $0x1e8] sm:$0xff] }
 0x11d   :  { %v394_v38 = vadd.f32 %v393_v37, %v374_v36  ;;  %v548_v36 = vld [vmem:[%s1768_s9 + $0x150] sm:$0xff]  ;;  %v549_v37 = vld [vmem:[%s1768_s9 + $0x158] sm:$0xff] }
 0x11e   :  { %663 = vmatpush.msra.mxu0 %v549_v37  ;;  %v559_v37 = vld [vmem:[%s1768_s9 + $0x1a8] sm:$0xff] }
 0x11f   :  { %v396_v39 = vmul.f32 %v394_v38, %v100_v9  ;;  %v550_v38 = vld [vmem:[%s1768_s9 + $0x160] sm:$0xff] }
 0x120   :  { %683 = vmatpush.msrb.mxu2 %v550_v38  ;;  %v560_v38 = vld [vmem:[%s1768_s9 + $0x1b0] sm:$0xff] }
 0x121   :  { %v398_v40 = vand.u32 2147483647, %v396_v39  ;;  %v397_v46 = vmax.f32 %v396_v39, 0.0 }
 0x123   :  { %v399_v41 = vsub.f32 0.0, %v398_v40  ;;  %v541_v40 = vld [vmem:[%s1768_s9 + $0x118] sm:$0xff] }
 0x125   :  { %v400_v42 = vmul.f32 1.442695, %v399_v41  ;;  %v542_v41 = vld [vmem:[%s1768_s9 + $0x120] sm:$0xff] }
 0x126   :  { %664 = vmatpush.msra.mxu0 %v542_v41  ;;  %v552_v41 = vld [vmem:[%s1768_s9 + $0x170] sm:$0xff] }
 0x127   :  { %812 = vpow2.f32 %v400_v42 }
 0x12d   :  { %v813_v43 = vpop.eup %812 }
 0x12e   :  { %v402_v44 = vadd.f32 1.0, %v813_v43  ;;  %v543_v43 = vld [vmem:[%s1768_s9 + $0x128] sm:$0xff] }
 0x12f   :  { %684 = vmatpush.msrb.mxu2 %v543_v43  ;;  %v554_v43 = vld [vmem:[%s1768_s9 + $0x180] sm:$0xff] }
 0x130   :  { %814 = vlog2.f32 %v402_v44  ;;  %v534_v44 = vld [vmem:[%s1768_s9 + $0xe0] sm:$0xff] }
 0x136   :  { %v815_v45 = vpop.eup %814 }
 0x137   :  { %v404_v47 = vmul.f32 0.6931472, %v815_v45  ;;  %v535_v45 = vld [vmem:[%s1768_s9 + $0xe8] sm:$0xff] }
 0x138   :  { %665 = vmatpush.msra.mxu0 %v535_v45  ;;  %v545_v45 = vld [vmem:[%s1768_s9 + $0x138] sm:$0xff] }
 0x139   :  { %v405_v48 = vadd.f32 %v404_v47, %v397_v46  ;;  %v536_v46 = vld [vmem:[%s1768_s9 + $0xf0] sm:$0xff] }
 0x13a   :  { %685 = vmatpush.msrb.mxu2 %v536_v46  ;;  %666 = vmatpush.msra.mxu0 %v528_v53  ;;  %v546_v46 = vld [vmem:[%s1768_s9 + $0x140] sm:$0xff] }
 0x13b   :  { %442 = vmatmul.f32.vlgmr.msra.gmra.mxu2 %v405_v48 }
 0x13c   :  { %686 = vmatpush.msrb.mxu2 %v529_v54  ;;  %667 = vmatpush.msra.mxu0 %v521_v57  ;;  %v531_v54 = vld [vmem:[%s1768_s9 + $0xc8] sm:$0xff] }
 0x13e   :  { %687 = vmatpush.msrb.mxu2 %v522_v58  ;;  %668 = vmatpush.msra.mxu0 %v514_v61  ;;  %v524_v58 = vld [vmem:[%s1768_s9 + $0x90] sm:$0xff]  ;;  %v517_v61 = vld [vmem:[%s1768_s9 + $0x58] sm:$0xff] }
 0x140   :  { %688 = vmatpush.msrb.mxu2 %v515_v62  ;;  %669 = vmatpush.msra.mxu0 %v507_v1  ;;  %v518_v62 = vld [vmem:[%s1768_s9 + $0x60] sm:$0xff] }
 0x141   :  { %v510_v1 = vld [vmem:[%s1768_s9 + $0x20] sm:$0xff] }
 0x142   :  { %689 = vmatpush.msrb.mxu2 %v508_v2  ;;  %v511_v2 = vld [vmem:[%s1768_s9 + $0x28] sm:$0xff] }
 0x144   :  { %754 = vmatpush.msra.mxu2 %v617_v6 }
 0x146   :  { %755 = vmatpush.msra.mxu2 %v610_v10 }
 0x148   :  { %756 = vmatpush.msra.mxu2 %v603_v14 }
 0x1be   :  { %v443_v5 = vpop.f32.mrf.mxu2 }
 0x1bf   :  { %v444_v9 = vadd.f32 %v810_v0, %v443_v5  ;;  %v506_v0 = vld [vmem:[%s1768_s9] sm:$0xff]  ;;  %v616_v5 = vld [vmem:[%s1768_s9 + $0x370] sm:$0xff] }
 0x1c0   :  { %734 = vmatpush.msrb.mxu0 %v616_v5 }
 0x1c1   :  { %v1435_v13 = vmul.f32 %v444_v9, %v1333_v18  ;;  %v583_v18 = vld [vmem:[%s1768_s9 + $0x268] sm:$0xff]  ;;  %v609_v9 = vld [vmem:[%s1768_s9 + $0x338] sm:$0xff] }
 0x1c2   :  { %638 = vmatpush.msra.mxu3 %v583_v18  ;;  %735 = vmatpush.msrb.mxu0 %v609_v9  ;;  %v596_v18 = vld [vmem:[%s1768_s9 + $0x2d0] sm:$0xff] }
 0x1c3   :  { %v448_v19 = vand.u32 2147483647, %v1435_v13  ;;  %v447_v48 = vmax.f32 %v1435_v13, 0.0  ;;  %v602_v13 = vld [vmem:[%s1768_s9 + $0x300] sm:$0xff]  ;;  %757 = vmatpush.msra.mxu2 %v596_v18 }
 0x1c4   :  { %639 = vmatpush.msra.mxu3 %v576_v23  ;;  %736 = vmatpush.msrb.mxu0 %v602_v13  ;;  %v589_v23 = vld [vmem:[%s1768_s9 + $0x298] sm:$0xff] }
 0x1c5   :  { %v449_v22 = vsub.f32 0.0, %v448_v19  ;;  %v595_v19 = vld [vmem:[%s1768_s9 + $0x2c8] sm:$0xff]  ;;  %758 = vmatpush.msra.mxu2 %v589_v23 }
 0x1c6   :  { %640 = vmatpush.msra.mxu3 %v569_v27  ;;  %737 = vmatpush.msrb.mxu0 %v595_v19  ;;  %v582_v27 = vld [vmem:[%s1768_s9 + $0x260] sm:$0xff] }
 0x1c7   :  { %v450_v26 = vmul.f32 1.442695, %v449_v22  ;;  %v588_v22 = vld [vmem:[%s1768_s9 + $0x290] sm:$0xff]  ;;  %759 = vmatpush.msra.mxu2 %v582_v27 }
 0x1c8   :  { %641 = vmatpush.msra.mxu3 %v562_v30  ;;  %738 = vmatpush.msrb.mxu0 %v588_v22  ;;  %v574_v30 = vld [vmem:[%s1768_s9 + $0x220] sm:$0xff] }
 0x1c9   :  { %816 = vpow2.f32 %v450_v26  ;;  %v581_v26 = vld [vmem:[%s1768_s9 + $0x258] sm:$0xff]  ;;  %760 = vmatpush.msra.mxu2 %v575_v31 }
 0x1ca   :  { %642 = vmatpush.msra.mxu3 %v555_v33  ;;  %739 = vmatpush.msrb.mxu0 %v581_v26  ;;  %v566_v33 = vld [vmem:[%s1768_s9 + $0x1e0] sm:$0xff] }
 0x1cb   :  { %761 = vmatpush.msra.mxu2 %v568_v35 }
 0x1cc   :  { %643 = vmatpush.msra.mxu3 %v548_v36  ;;  %740 = vmatpush.msrb.mxu0 %v574_v30  ;;  %v530_v36 = vld [vmem:[%s1768_s9 + $0xc0] sm:$0xff] }
 0x1cd   :  { %706 = vmatpush.msrb.mxu1 %v530_v36 }
 0x1ce   :  { %644 = vmatpush.msra.mxu3 %v541_v40  ;;  %741 = vmatpush.msrb.mxu0 %v567_v34  ;;  %v523_v40 = vld [vmem:[%s1768_s9 + $0x88] sm:$0xff] }
 0x1cf   :  { %v817_v39 = vpop.eup %816  ;;  %707 = vmatpush.msrb.mxu1 %v523_v40 }
 0x1d0   :  { %v452_v42 = vadd.f32 1.0, %v817_v39  ;;  %645 = vmatpush.msra.mxu3 %v534_v44  ;;  %v561_v39 = vld [vmem:[%s1768_s9 + $0x1b8] sm:$0xff]  ;;  %742 = vmatpush.msrb.mxu0 %v560_v38  ;;  %v516_v44 = vld [vmem:[%s1768_s9 + $0x50] sm:$0xff] }
 0x1d1   :  { %762 = vmatpush.msra.mxu2 %v561_v39  ;;  %708 = vmatpush.msrb.mxu1 %v516_v44 }
 0x1d2   :  { %818 = vlog2.f32 %v452_v42  ;;  %646 = vmatpush.msra.mxu3 %v527_v52  ;;  %v553_v42 = vld [vmem:[%s1768_s9 + $0x178] sm:$0xff]  ;;  %v540_v52 = vld [vmem:[%s1768_s9 + $0x110] sm:$0xff] }
 0x1d3   :  { %743 = vmatpush.msrb.mxu0 %v553_v42  ;;  %763 = vmatpush.msra.mxu2 %v554_v43 }
 0x1d4   :  { %647 = vmatpush.msra.mxu3 %v520_v56  ;;  %v533_v56 = vld [vmem:[%s1768_s9 + $0xd8] sm:$0xff] }
 0x1d5   :  { %744 = vmatpush.msrb.mxu0 %v546_v46 }
 0x1d6   :  { %648 = vmatpush.msra.mxu3 %v513_v60  ;;  %v526_v60 = vld [vmem:[%s1768_s9 + $0xa0] sm:$0xff] }
 0x1d7   :  { %745 = vmatpush.msrb.mxu0 %v539_v51 }
 0x1d8   :  { %v819_v47 = vpop.eup %818  ;;  %649 = vmatpush.msra.mxu3 %v506_v0  ;;  %v519_v0 = vld [vmem:[%s1768_s9 + $0x68] sm:$0xff] }
 0x1d9   :  { %v454_v49 = vmul.f32 0.6931472, %v819_v47  ;;  %v811_v47 = vld [vmem:[%s1767_s8] ss:$0 sm:$0xff]  ;;  %746 = vmatpush.msrb.mxu0 %v532_v55 }
 0x1da   :  { %714 = vmatpush.msrb.mxu3 %v615_v4 }
 0x1db   :  { %v455_v50 = vadd.f32 %v454_v49, %v447_v48  ;;  %v547_v48 = vld [vmem:[%s1768_s9 + $0x148] sm:$0xff]  ;;  %v509_v49 = vld [vmem:[%s1768_s9 + $0x18] sm:$0xff]  ;;  %747 = vmatpush.msrb.mxu0 %v525_v59 }
 0x1dc   :  { %715 = vmatpush.msrb.mxu3 %v608_v8  ;;  %764 = vmatpush.msra.mxu2 %v547_v48 }
 0x1dd   :  { %492 = vmatmul.f32.vlgmr.msra.gmra.mxu1 %v455_v50  ;;  %v538_v50 = vld [vmem:[%s1768_s9 + $0x100] sm:$0xff]  ;;  %748 = vmatpush.msrb.mxu0 %v518_v62 }
 0x1de   :  { %716 = vmatpush.msrb.mxu3 %v601_v12  ;;  %709 = vmatpush.msrb.mxu1 %v509_v49  ;;  %v618_v12 = vld [vmem:[%s1769_s10] sm:$0x7f]  ;;  %s852_s10 = smov [#allocation2]  }
 0x1df   :  { %765 = vmatpush.msra.mxu2 %v540_v52  ;;  %749 = vmatpush.msrb.mxu0 %v511_v2  ;;  %v621_v13 = vperm.slane %v618_v12, 1  ;;  %v623_v14 = vperm.slane %v618_v12, 3  ;;  %v620_v20 = vperm.slane %v618_v12, 0  ;;  %v625_v22 = vperm.slane %v618_v12, 5  ;;  %s786_s26 = sshll.u32 %s852_s10, 4  ;;  %s787_s26 = int_to_ptr.vmem [resolvable:$true] %s786_s26 }
 0x1e0   :  { %717 = vmatpush.msrb.mxu3 %v594_v16  ;;  %v626_v30 = vperm.slane %v618_v12, 6 }
 0x1e1   :  { %766 = vmatpush.msra.mxu2 %v533_v56 }
 0x1e2   :  { %718 = vmatpush.msrb.mxu3 %v587_v21  ;;  %v622_v21 = vperm.slane %v618_v12, 2 }
 0x1e3   :  { %767 = vmatpush.msra.mxu2 %v526_v60 }
 0x1e4   :  { %719 = vmatpush.msrb.mxu3 %v580_v25 }
 0x1e5   :  { %768 = vmatpush.msra.mxu2 %v519_v0 }
 0x1e6   :  { %720 = vmatpush.msrb.mxu3 %v573_v29  ;;  %v624_v29 = vperm.slane %v618_v12, 4 }
 0x1e8   :  { %721 = vmatpush.msrb.mxu3 %v566_v33 }
 0x1ea   :  { %722 = vmatpush.msrb.mxu3 %v559_v37 }
 0x1ec   :  { %723 = vmatpush.msrb.mxu3 %v552_v41 }
 0x1ee   :  { %724 = vmatpush.msrb.mxu3 %v545_v45 }
 0x1f0   :  { %725 = vmatpush.msrb.mxu3 %v538_v50 }
 0x1f2   :  { %726 = vmatpush.msrb.mxu3 %v531_v54 }
 0x1f4   :  { %727 = vmatpush.msrb.mxu3 %v524_v58 }
 0x1f6   :  { %728 = vmatpush.msrb.mxu3 %v517_v61 }
 0x1f8   :  { %729 = vmatpush.msrb.mxu3 %v510_v1 }
 0x25a   :  { %v493_v53 = vpop.f32.mrf.mxu1 }
 0x25b   :  { %v494_v57 = vadd.f32 %v811_v47, %v493_v53 }
 0x25d   :  { %v496_v63 = vmul.f32 %v494_v57, %v1331_v17  ;;  %v512_v17 = vld [vmem:[%s1768_s9 + $0x30] sm:$0xff] }
 0x25e   :  { %769 = vmatpush.msra.mxu2 %v512_v17 }
 0x25f   :  { %v498_v3 = vand.u32 2147483647, %v496_v63  ;;  %v497_v9 = vmax.f32 %v496_v63, 0.0 }
 0x261   :  { %v499_v4 = vsub.f32 0.0, %v498_v3 }
 0x263   :  { %v500_v5 = vmul.f32 1.442695, %v499_v4 }
 0x265   :  { %820 = vpow2.f32 %v500_v5 }
 0x26b   :  { %v821_v6 = vpop.eup %820 }
 0x26c   :  { %v502_v7 = vadd.f32 1.0, %v821_v6 }
 0x26e   :  { %822 = vlog2.f32 %v502_v7 }
 0x274   :  { %v823_v8 = vpop.eup %822 }
 0x275   :  { %v504_v10 = vmul.f32 0.6931472, %v823_v8 }
 0x277   :  { %v505_v11 = vadd.f32 %v504_v10, %v497_v9 }
 0x279   :  { %650 = vmatmul.f32.vlgmr.msra.gmra.mxu3 %v505_v11  ;;  %670 = vmatmul.f32.vlgmr.msra.gmra.mxu0 %v505_v11 }
 0x27a   :  { %690 = vmatmul.f32.vlgmr.msrb.gmra.mxu2 %v505_v11  ;;  %710 = vmatmul.f32.vlgmr.msrb.gmra.mxu1 %v505_v11 }
 0x281   :  { %730 = vmatmul.f32.vlgmr.msrb.gmra.mxu3 %v505_v11  ;;  %750 = vmatmul.f32.vlgmr.msrb.gmra.mxu0 %v505_v11 }
 0x282   :  { %770 = vmatmul.f32.vlgmr.msra.gmra.mxu2 %v505_v11 }
 0x2f6   :  { %v671_v15 = vpop.f32.mrf.mxu0 }
 0x2f7   :  { %v672_v16 = vadd.f32 %v671_v15, %v621_v13  ;;  %v711_v19 = vpop.f32.mrf.mxu1 }
 0x2f8   :  { %v712_v18 = vadd.f32 %v711_v19, %v623_v14 }
 0x2f9   :  { %775 = vst [vmem:[#allocation2 + $0x8] sm:$0xff] %v672_v16 }
 0x2fa   :  { %777 = vst [vmem:[#allocation2 + $0x18] sm:$0xff] %v712_v18 }
 0x2fc   :  { %v651_v23 = vpop.f32.mrf.mxu3 }
 0x2fd   :  { %v652_v24 = vadd.f32 %v651_v23, %v620_v20  ;;  %v691_v25 = vpop.f32.mrf.mxu2 }
 0x2fe   :  { %v692_v26 = vadd.f32 %v691_v25, %v622_v21  ;;  %v751_v27 = vpop.f32.mrf.mxu0 }
 0x2ff   :  { %774 = vst [vmem:[#allocation2] sm:$0xff] %v652_v24  ;;  %v752_v28 = vadd.f32 %v751_v27, %v625_v22 }
 0x300   :  { %776 = vst [vmem:[#allocation2 + $0x10] sm:$0xff] %v692_v26 }
 0x301   :  { %779 = vst [vmem:[#allocation2 + $0x28] sm:$0xff] %v752_v28 }
 0x304   :  { %v731_v31 = vpop.f32.mrf.mxu3 }
 0x305   :  { %v732_v32 = vadd.f32 %v731_v31, %v624_v29  ;;  %v771_v33 = vpop.f32.mrf.mxu2 }
 0x306   :  { %v772_v34 = vadd.f32 %v771_v33, %v626_v30 }
 0x307   :  { %778 = vst [vmem:[#allocation2 + $0x20] sm:$0xff] %v732_v32 }
 0x308   :  { %780 = vst.msk [vmem:[#allocation2 + $0x30] sm:$0xff] %vm252_vm3, %v772_v34 }
 0x309   :  { %791 = dma.vmem_to_hbm [thread:$0]  %s787_s26, 896, %s789_s3, [#allocation3]  }
 0x30a   :  { %848 = dma.done.wait [#allocation3], 896  }
 0x30b   :  { %849 = vsyncadd [#allocation3], 4294966400 }
 0x30c   :  { %796 = vsyncpa [#allocation3], 1 }

</bundles_post_ra>
